<compile_context>
chip_gen: v5e
topology: v5e:2x2
jax: 0.10.0
libtpu: 0.0.40
codegen_flags: <defaults>
</compile_context>

<pallas_src>
import functools

import jax
import jax.numpy as jnp
from jax.experimental import pallas as pl
from jax.experimental.pallas import tpu as pltpu

_LANE = 128
_BATCH_ALIGN = 16  # sublane alignment; 16 keeps packed-bf16 output rows tile-aligned


def _round_up(x: int, m: int) -> int:
    return (x + m - 1) // m * m


def make_snn_mlp_kernel(threshold: float):
    thr = float(threshold)  # Python scalar -> jaxpr literal (no captured constants)

    def kernel(x_ref, w1_ref, w2_ref, out_ref):
        # Hidden layer: Linear (MXU matmul, f32 accumulate) + LIF fire.
        v1 = jnp.dot(x_ref[...], w1_ref[...], preferred_element_type=jnp.float32)
        s1 = (v1 >= thr).astype(w2_ref.dtype)  # binary spikes: exact in bf16 or f32
        # Output layer: Linear + LIF fire.
        v2 = jnp.dot(s1, w2_ref[...], preferred_element_type=jnp.float32)
        out_ref[...] = (v2 >= thr).astype(out_ref.dtype)  # 0/1 spikes: exact in bf16

    return kernel


def prepare_weights(w1_t, w2_t, compute_dtype=jnp.float32):
    """Hoisted out of the per-call path: cast + lane-pad the weights once at init.

    w1_t: [E, H], w2_t: [H, C] (pre-transposed to [in, out]).
    Returns (w1_p, w2_p) with w2 padded to [H, round_up(C, 128)] so the kernel's
    output store is lane-dense (unmasked vst).
    """
    C = w2_t.shape[1]
    C_pad = _round_up(C, _LANE)
    w1_p = w1_t.astype(compute_dtype)
    w2_p = jnp.pad(w2_t.astype(compute_dtype), ((0, 0), (0, C_pad - C)))
    return w1_p, w2_p


@functools.partial(
    jax.jit,
    static_argnames=("threshold", "num_classes", "batch_tile", "compute_dtype"))
def snn_mlp_forward(x, w1_p, w2_p, threshold, num_classes, *,
                    batch_tile=512, compute_dtype=jnp.float32):
    """x: [B, E]; w1_p: [E, H]; w2_p: [H, C_pad] from prepare_weights().

    Returns [B, num_classes] float32 spikes (0.0 / 1.0).
    """
    B, E = x.shape
    E2, H = w1_p.shape
    H2, C_pad = w2_p.shape
    C = int(num_classes)
    assert E == E2 and H == H2 and C_pad % _LANE == 0 and C <= C_pad

    # Resident-weight guard: the constant (0,0) index_maps keep both weights
    # pinned in VMEM for the whole grid. Fine at KB sizes; at production feature
    # sizes a K/N reduction grid axis would be needed (v7x: 64 MiB VMEM).
    weight_bytes = w1_p.size * w1_p.dtype.itemsize + w2_p.size * w2_p.dtype.itemsize
    assert weight_bytes <= 16 * 1024 * 1024, (
        "weights too large to keep resident in VMEM; add a reduction grid axis")

    # --- adaptive batch tiling: no over-padding for tiny batches -------------
    tile = min(_round_up(B, _BATCH_ALIGN), _round_up(int(batch_tile), _BATCH_ALIGN))
    B_pad = _round_up(B, tile)
    # Megacore split (v7x: 2 TCs) only when each half gets >= 128 real rows;
    # never split for small batches (on v5e/v6e it is just an extra sequential step).
    if B_pad // tile == 1 and B >= 2 * _LANE and tile % (2 * _BATCH_ALIGN) == 0:
        tile //= 2
    grid = (B_pad // tile,)

    x_p = x.astype(compute_dtype)
    if B_pad != B:
        x_p = jnp.pad(x_p, ((0, B_pad - B), (0, 0)))

    kernel = make_snn_mlp_kernel(threshold)
    out_dtype = jnp.bfloat16  # 0/1 spikes exact in bf16 -> halves the output writeback

    # Un-padded cost so XLA doesn't over-schedule around an inflated estimate.
    cost = pl.CostEstimate(
        flops=2 * B * (E * H + H * C),
        transcendentals=0,
        bytes_accessed=(B * E * x_p.dtype.itemsize + weight_bytes
                        + B * C * jnp.dtype(out_dtype).itemsize),
    )

    out = pl.pallas_call(
        kernel,
        out_shape=jax.ShapeDtypeStruct((B_pad, C_pad), out_dtype),
        grid_spec=pltpu.PrefetchScalarGridSpec(
            num_scalar_prefetch=0,
            grid=grid,
            in_specs=[
                pl.BlockSpec((tile, E), lambda i: (i, 0)),    # batch tile of inputs
                pl.BlockSpec((E, H), lambda i: (0, 0)),       # W1^T resident in VMEM
                pl.BlockSpec((H, C_pad), lambda i: (0, 0)),   # W2^T resident in VMEM
            ],
            out_specs=pl.BlockSpec((tile, C_pad), lambda i: (i, 0)),  # lane-dense store
        ),
        compiler_params=pltpu.CompilerParams(
            dimension_semantics=("parallel",),
        ),
        cost_estimate=cost,
    )(x_p, w1_p, w2_p)

    # Strip batch/class padding and widen the tiny [B, C] view to f32 outside.
    return out[:B, :C].astype(jnp.float32)


def reference_forward(x, w1_t, w2_t, threshold):
    s1 = (x @ w1_t >= threshold).astype(jnp.float32)
    return (s1 @ w2_t >= threshold).astype(jnp.float32)


if __name__ == "__main__":
    # Small shapes consistent with the module's constructor.
    batch = 8
    num_encoders = 16
    hidden_size = 32
    num_classes = 10
    threshold_value = 0.25
    leak = 2.0           # tau; irrelevant for a single step starting from v=0
    bias_option = False  # nn.Linear(..., bias=bias_option) with bias disabled
    # TODO(synk): multi-timestep LIF state carry (decay + reset) is not exercised by
    # this single-step forward; it would need a T-loop with a membrane-potential
    # scratch accumulator in VMEM.

    key = jax.random.PRNGKey(0)
    k_x, k_w1, k_w2 = jax.random.split(key, 3)

    # Deterministic parameter init (PyTorch Linear default: U(-1/sqrt(fan_in), +1/sqrt(fan_in))).
    bound1 = 1.0 / (num_encoders ** 0.5)
    bound2 = 1.0 / (hidden_size ** 0.5)
    # Stored pre-transposed as [in, out] so the kernel computes x @ W.
    w1_t = jax.random.uniform(k_w1, (num_encoders, hidden_size),
                              minval=-bound1, maxval=bound1, dtype=jnp.float32)
    w2_t = jax.random.uniform(k_w2, (hidden_size, num_classes),
                              minval=-bound2, maxval=bound2, dtype=jnp.float32)

    # Poisson-encoder-style binary spike input [B, num_encoders].
    x = jax.random.bernoulli(k_x, p=0.5, shape=(batch, num_encoders)).astype(jnp.float32)

    # Weight cast/pad hoisted out of the per-call path (done once at "model init").
    w1_p, w2_p = prepare_weights(w1_t, w2_t, compute_dtype=jnp.float32)

    out = snn_mlp_forward(x, w1_p, w2_p, threshold_value, num_classes)
    out = jax.block_until_ready(out)

    ref = reference_forward(x, w1_t, w2_t, threshold_value)
    assert out.shape == (batch, num_classes)
    assert jnp.array_equal(out, ref), (out, ref)

    print("KERNEL_OK")
</pallas_src>

<mosaic_0001>
module attributes {stable_mosaic.version = 11 : i64} {
  func.func @kernel(%arg0: i32, %arg1: memref<16x16xf32, #tpu.memory_space<vmem>>, %arg2: memref<16x32xf32, #tpu.memory_space<vmem>>, %arg3: memref<32x128xf32, #tpu.memory_space<vmem>>, %arg4: memref<16x128xbf16, #tpu.memory_space<vmem>>) attributes {dimension_semantics = [#tpu.dimension_semantics<parallel>], iteration_bounds = array<i64: 1>, scalar_prefetch = 0 : i64, scratch_operands = 0 : i64, tpu.core_type = #tpu.core_type<tc>, window_params = [{transform_indices = @transform_0, window_bounds = array<i64: 16, 16>}, {pipeline_mode = #tpu.pipeline_mode<synchronous>, transform_indices = @transform_1, window_bounds = array<i64: 16, 32>}, {pipeline_mode = #tpu.pipeline_mode<synchronous>, transform_indices = @transform_2, window_bounds = array<i64: 32, 128>}, {transform_indices = @transform_3, window_bounds = array<i64: 16, 128>}]} {
    %c0 = arith.constant 0 : index
    %c0_0 = arith.constant 0 : index
    %0 = vector.load %arg1[%c0, %c0_0] : memref<16x16xf32, #tpu.memory_space<vmem>>, vector<16x16xf32>
    %c0_1 = arith.constant 0 : index
    %c0_2 = arith.constant 0 : index
    %1 = vector.load %arg2[%c0_1, %c0_2] : memref<16x32xf32, #tpu.memory_space<vmem>>, vector<16x32xf32>
    %cst = arith.constant dense<0.000000e+00> : vector<16x32xf32>
    %2 = tpu.matmul %0, %1, %cst {dimension_numbers = #tpu.dot_dimension_numbers<[1], [0], [0], [1], [0, 0, 1, 1], [], []>} : vector<16x16xf32>, vector<16x32xf32>, vector<16x32xf32> -> vector<16x32xf32>
    %cst_3 = arith.constant 2.500000e-01 : f32
    %3 = vector.broadcast %cst_3 : f32 to vector<16x32xf32>
    %4 = arith.cmpf oge, %2, %3 : vector<16x32xf32>
    %5 = arith.extui %4 : vector<16x32xi1> to vector<16x32xi32>
    %6 = arith.sitofp %5 : vector<16x32xi32> to vector<16x32xf32>
    %c0_4 = arith.constant 0 : index
    %c0_5 = arith.constant 0 : index
    %7 = vector.load %arg3[%c0_4, %c0_5] : memref<32x128xf32, #tpu.memory_space<vmem>>, vector<32x128xf32>
    %cst_6 = arith.constant dense<0.000000e+00> : vector<16x128xf32>
    %8 = tpu.matmul %6, %7, %cst_6 {dimension_numbers = #tpu.dot_dimension_numbers<[1], [0], [0], [1], [0, 0, 1, 1], [], []>} : vector<16x32xf32>, vector<32x128xf32>, vector<16x128xf32> -> vector<16x128xf32>
    %cst_7 = arith.constant 2.500000e-01 : f32
    %9 = vector.broadcast %cst_7 : f32 to vector<16x128xf32>
    %10 = arith.cmpf oge, %8, %9 : vector<16x128xf32>
    %11 = arith.extui %10 : vector<16x128xi1> to vector<16x128xi32>
    %12 = arith.sitofp %11 : vector<16x128xi32> to vector<16x128xf32>
    %13 = arith.truncf %12 : vector<16x128xf32> to vector<16x128xbf16>
    %c0_8 = arith.constant 0 : index
    %c0_9 = arith.constant 0 : index
    %14 = vector.load %arg4[%c0_8, %c0_9] : memref<16x128xbf16, #tpu.memory_space<vmem>>, vector<16x128xbf16>
    tpu.vector_store %arg4[%c0_8, %c0_9], %13 {strides = array<i32>} : memref<16x128xbf16, #tpu.memory_space<vmem>>, vector<16x128xbf16>,
    return
  }
  func.func @transform_0(%arg0: i32) -> (i32, i32) {
    %c0_i32 = arith.constant 0 : i32
    %c0_i32_0 = arith.constant 0 : i32
    return %arg0, %c0_i32 : i32, i32
  }
  func.func @transform_1(%arg0: i32) -> (i32, i32) {
    %c0_i32 = arith.constant 0 : i32
    %c0_i32_0 = arith.constant 0 : i32
    %c0_i32_1 = arith.constant 0 : i32
    return %c0_i32, %c0_i32_0 : i32, i32
  }
  func.func @transform_2(%arg0: i32) -> (i32, i32) {
    %c0_i32 = arith.constant 0 : i32
    %c0_i32_0 = arith.constant 0 : i32
    %c0_i32_1 = arith.constant 0 : i32
    return %c0_i32, %c0_i32_0 : i32, i32
  }
  func.func @transform_3(%arg0: i32) -> (i32, i32) {
    %c0_i32 = arith.constant 0 : i32
    %c0_i32_0 = arith.constant 0 : i32
    return %arg0, %c0_i32 : i32, i32
  }
}

</mosaic_0001>

<bundles_post_ra>
// kernel: snn_mlp_forward.1
= control target key start
LH: loop header
LB: loop body
LE: loop exit
PB: predicated region body
PF: predicated region fallthrough
CT: control target
= control target key end

     0   :  { %8 = vsyncpa [#allocation3], 0  ;;  %s166_s15 = smov [#allocation2]   ;;  %s167_s17 = smov 128   ;;  %s208_s0 = inlined_call_operand.vmem [shape: f32[16,16], index: 0, kind: input, shape index: {}]   ;;  %s209_s1 = inlined_call_operand.vmem [shape: f32[16,32], index: 1, kind: input, shape index: {}]   ;;  %s210_s2 = inlined_call_operand.hbm [shape: f32[32,128], index: 2, kind: input, shape index: {}]   ;;  %s211_s3 = inlined_call_operand.vmem [shape: bf16[16,128], index: 3, kind: output, shape index: {}]  }
   0x1   :  { %s17_s14 = sshll.u32 %s210_s2, 4  ;;  %s19_s16 = sshll.u32 %s166_s15, 4  ;;  %s18_s14 = int_to_ptr.hbm [resolvable:$true] %s17_s14  ;;  %s20_s16 = int_to_ptr.vmem [resolvable:$true] %s19_s16 }
   0x2   :  { %s168_s18 = smov 8  }
   0x3   :  { %25 = dma.hbm_to_vmem [thread:$0]  %s18_s14, 512, %s20_s16, [#allocation3], %s167_s17, %s167_s17, %s168_s18  }
   0x4   :  { %164 = dma.done.wait [#allocation3], 512  }
   0x5   :  { %165 = vsyncadd [#allocation3], 4294966784  ;;  %v33_v0 = vld [vmem:[%s209_s1 + $0x8] sm:$0xff]  ;;  %v32_v1 = vld [vmem:[%s209_s1] sm:$0xff]  ;;  %vm34_vm0 = vcmask 130048   ;;  %vm74_vm2 = vcmask 261120  }
   0x6   :  { %130 = vmatpush.msra.mxu3 %v33_v0  ;;  %v31_v2 = vld [vmem:[%s208_s0 + $0x8] sm:$0xff]  ;;  %55 = vmatpush.msra.mxu0 %v33_v0  ;;  %v30_v3 = vld [vmem:[%s208_s0] sm:$0xff]  ;;  %v73_v4 = vld [vmem:[#allocation2 + $0x18] sm:$0xff]  ;;  %v169_v9 = vmov 0.0  }
   0x7   :  { %132 = vmatpush.msra.mxu2 %v73_v4  ;;  %v72_v5 = vld [vmem:[#allocation2 + $0x10] sm:$0xff]  ;;  %93 = vmatpush.msra.mxu1 %v73_v4  ;;  %v71_v6 = vld [vmem:[#allocation2 + $0x8] sm:$0xff]  ;;  %v70_v7 = vld [vmem:[#allocation2] sm:$0xff] }
   0x8   :  { %131 = vmatpush.msra.mxu3 %v32_v1  ;;  %56 = vmatpush.msra.mxu0 %v32_v1 }
   0x9   :  { %120 = vmatmul.msk.f32.vlgmr.msra.gmra.mxu3 %vm34_vm0, %v31_v2  ;;  %119 = vmatmul.msk.f32.vlgmr.msra.gmra.mxu0 %vm34_vm0, %v30_v3 }
   0xa   :  { %133 = vmatpush.msra.mxu2 %v72_v5  ;;  %94 = vmatpush.msra.mxu1 %v72_v5 }
   0xc   :  { %134 = vmatpush.msra.mxu2 %v71_v6  ;;  %95 = vmatpush.msra.mxu1 %v71_v6 }
   0xe   :  { %135 = vmatpush.msra.mxu2 %v70_v7  ;;  %96 = vmatpush.msra.mxu1 %v70_v7 }
  0x86   :  { %v58_v8 = vpop.f32.mrf.mxu0 }
  0x87   :  { %vm64_vm1 = vcmp.ge.f32.partialorder %v58_v8, 0.25 }
  0x88   :  { %v121_v10 = vsel %vm64_vm1, 1.0, %v169_v9 }
  0x89   :  { %123 = vmatmul.msk.f32.vlgmr.msra.gmra.mxu1 %vm74_vm2, %v121_v10 }
  0x8c   :  { %v61_v11 = vpop.f32.mrf.mxu3 }
  0x8d   :  { %vm65_vm3 = vcmp.ge.f32.partialorder %v61_v11, 0.25 }
  0x8e   :  { %v122_v12 = vsel %vm65_vm3, 1.0, %v169_v9 }
  0x8f   :  { %124 = vmatmul.msk.f32.vlgmr.msra.gmra.mxu2 %vm74_vm2, %v122_v12 }
 0x106   :  { %v98_v13 = vpop.f32.mrf.mxu1 }
 0x107   :  { %vm104_vm4 = vcmp.ge.f32.partialorder %v98_v13, 0.25 }
 0x108   :  { %v125_v14 = vsel %vm104_vm4, 1.0, %v169_v9 }
 0x112   :  { %v101_v15 = vpop.f32.mrf.mxu2 }
 0x113   :  { %vm105_vm5 = vcmp.ge.f32.partialorder %v101_v15, 0.25 }
 0x114   :  { %v126_v16 = vsel %vm105_vm5, 1.0, %v169_v9 }
 0x115   :  { %v128_v17 = vpack.c.bf16 %v126_v16, %v125_v14 }
 0x117   :  { %129 = vst [vmem:[%s211_s3] sm:$0xff] %v128_v17  }
 0x118   :  { %118 = vsyncpa [#allocation3], 1 }

</bundles_post_ra>
